<compile_context>
chip_gen: v7x
topology: tpu7x:2x2x1
jax: 0.10.0
libtpu: 0.0.40
codegen_flags: <defaults>
</compile_context>

<pallas_src>
import jax
import jax.numpy as jnp
from jax.experimental import pallas as pl
from jax.experimental.pallas import tpu as pltpu

SAMPLE_RATE = 1
LANE = 128


def _round_up(x, m):
    return (x + m - 1) // m * m


def _vmem_capacity_bytes():
    try:
        return int(pltpu.get_tpu_info().vmem_capacity_bytes)
    except Exception:
        return 64 << 20          # conservative fallback (v7x per-core VMEM)


# Queried once at import time, never on the forward path.
_VMEM_CAP = _vmem_capacity_bytes()


# ---------------------------------------------------------------------------
# F.adaptive_max_pool1d(masks, t): tiny masked max over L, done in plain JAX
# (a pallas_call here would be 100x launch overhead vs. nanoseconds of VPU work)
# ---------------------------------------------------------------------------
def adaptive_max_pool1d(masks, out_len):
    B, L = masks.shape
    i = jnp.arange(out_len)
    starts = (i * L) // out_len                       # PyTorch adaptive-pool windows
    ends = ((i + 1) * L + out_len - 1) // out_len
    idx = jnp.arange(L)
    sel = (idx[None, :] >= starts[:, None]) & (idx[None, :] < ends[:, None])
    # Windows are never empty (end > start for every i), so -inf never escapes.
    vals = jnp.where(sel[None, :, :], masks[:, None, :].astype(jnp.float32), -jnp.inf)
    return jnp.max(vals, axis=-1)                     # (B, out_len)


# ---------------------------------------------------------------------------
# One-time weight preparation (hoisted out of the forward path).
# ---------------------------------------------------------------------------
def prepare_weights(params, C, H, W):
    HW = H * W
    D = params['w_img'].shape[1]
    K = params['w_head'].shape[1]
    OUTW = _round_up(D + K, LANE)
    # Fold the spatial mean-pool into the projection (one deep contraction),
    # stream it in bf16 (dominant HBM traffic is x @ w1).
    w1 = jnp.repeat(params['w_img'].astype(jnp.float32) / float(HW), HW,
                    axis=0).astype(jnp.bfloat16)                       # (C*HW, D)
    b1 = params['b_img'].reshape(1, D).astype(jnp.float32)             # (1, D)
    # Identity-extended head weight: feat @ w2 = [feat | feat @ w_head | 0],
    # giving a single lane-dense 128-wide output slab at zero extra MXU cost.
    w2 = jnp.zeros((D, OUTW), jnp.float32)
    w2 = w2.at[:, :D].set(jnp.eye(D, dtype=jnp.float32))
    w2 = w2.at[:, D:D + K].set(params['w_head'].astype(jnp.float32))   # (D, OUTW)
    b2 = jnp.zeros((1, OUTW), jnp.float32).at[:, D:D + K].set(
        params['b_head'].reshape(1, K).astype(jnp.float32))            # (1, OUTW)
    return {'w1': w1, 'b1': b1, 'w2': w2, 'b2': b2, 'num_classes': K}


# ---------------------------------------------------------------------------
# Fused kernel: (pool+proj folded matmul, bf16) -> mask -> head -> mask,
# one merged 128-lane output.
# ---------------------------------------------------------------------------
def fused_encode_head(x_flat, mask_flat, prepared):
    """x_flat: (N, C*H*W) bf16, mask_flat: (N, 1) f32 ->
    (N, OUTW) f32 slab: lanes [0:D) masked embedding, lanes [D:D+K) masked score."""
    N, CHW = x_flat.shape
    w1, b1, w2, b2 = prepared['w1'], prepared['b1'], prepared['w2'], prepared['b2']
    D = w1.shape[1]
    OUTW = w2.shape[1]

    # Row tile: biggest that fits ~1/4 of VMEM (double-buffered x + out + mask),
    # capped at 2048 rows, rounded to 16 (bf16 sublane packing).  Small N => a
    # single grid step (grid steps are a serial loop on 1-TC chips).
    per_row = 2 * CHW * 2 + 2 * OUTW * 4 + 2 * 4
    cap = max(16, min(2048, (_VMEM_CAP // 4 // per_row) // 16 * 16))
    tile_n = max(16, min(cap, _round_up(N, 16)))
    grid = (pl.cdiv(N, tile_n),)   # tail rows: Pallas masks OOB writes of the last block

    weight_bytes = w1.size * 2 + (b1.size + w2.size + b2.size) * 4
    resident = tile_n * per_row + weight_bytes
    vmem_limit = int(min(int(0.9 * _VMEM_CAP), max(32 << 20, 2 * resident)))

    def kernel(x_ref, m_ref, w1_ref, b1_ref, w2_ref, b2_ref, out_ref):
        m = m_ref[...]                                            # (tile_n, 1) frame mask
        emb = jnp.dot(x_ref[...], w1_ref[...],
                      preferred_element_type=jnp.float32) + b1_ref[...]
        feat = emb * m                                            # image_embedding * masks
        comb = jnp.dot(feat, w2_ref[...],
                       preferred_element_type=jnp.float32) + b2_ref[...]
        lane = jax.lax.broadcasted_iota(jnp.int32, comb.shape, 1)
        # Feature lanes already carry the mask; score lanes get the head's mask too.
        out_ref[...] = jnp.where(lane < D, comb, comb * m)

    const = lambda i: (0, 0)
    out = pl.pallas_call(
        kernel,
        out_shape=jax.ShapeDtypeStruct((N, OUTW), jnp.float32),
        grid=grid,
        in_specs=[
            pl.BlockSpec((tile_n, CHW), lambda i: (i, 0)),
            pl.BlockSpec((tile_n, 1), lambda i: (i, 0)),
            # Grid-invariant weights: single-buffered (no double-buffer VMEM).
            pl.BlockSpec((CHW, D), const, pipeline_mode=pl.Buffered(1)),
            pl.BlockSpec((1, D), const, pipeline_mode=pl.Buffered(1)),
            pl.BlockSpec((D, OUTW), const, pipeline_mode=pl.Buffered(1)),
            pl.BlockSpec((1, OUTW), const, pipeline_mode=pl.Buffered(1)),
        ],
        out_specs=pl.BlockSpec((tile_n, OUTW), lambda i: (i, 0)),
        compiler_params=pltpu.CompilerParams(
            dimension_semantics=("parallel",),
            vmem_limit_bytes=vmem_limit),
    )(x_flat, mask_flat, w1, b1, w2, b2)
    return out


# ---------------------------------------------------------------------------
# Forward pass glue (mirrors ActionCLIPSegmentation.forward)
# ---------------------------------------------------------------------------
def action_clip_segmentation_forward(input_data, prepared):
    masks = input_data['masks']                  # (b, L)
    imgs = input_data['imgs']                    # (b, t, C, H, W)
    labels = input_data['labels']                # (b, t)

    b, t, C, H, W = imgs.shape
    D = prepared['w1'].shape[1]
    K = prepared['num_classes']

    # masks = F.adaptive_max_pool1d(masks, imgs.shape[1]); masks = masks.unsqueeze(1)
    pooled = adaptive_max_pool1d(masks, t)       # (b, t)
    masks3 = pooled[:, None, :]                  # (b, 1, t)

    # text_prompt is None -> text_embedding = labels
    # TODO(synk): CLIP text encoder (text_prompt) is an external backbone; configured to None here.
    text_embedding = labels

    # imgs = torch.reshape(imgs, [-1] + imgs.shape[2:]) (+ flatten C,H,W so the
    # fused kernel does one deep bf16 matmul with the spatial pool folded into w1)
    x_flat = imgs.reshape(b * t, C * H * W).astype(jnp.bfloat16)

    imgs_masks = masks3[:, :, ::SAMPLE_RATE]                            # (b, 1, t)
    mask_flat = imgs_masks.transpose(0, 2, 1).reshape(b * t, 1).astype(jnp.float32)

    # encode_image -> mask -> head -> mask, all in one fused pallas_call.
    slab = fused_encode_head(x_flat, mask_flat, prepared)               # (b*t, OUTW)
    feat_flat = slab[:, :D]
    score_flat = slab[:, D:D + K]

    image_embedding = feat_flat.reshape(b, t, D).transpose(0, 2, 1)     # (b, D, t)
    head_score = score_flat.reshape(b, t, K).transpose(0, 2, 1)         # (b, K, t)

    # fusion_neck is None -> neck_feature = image_embedding, text_feature = text_embedding
    # TODO(synk): fusion_neck and aligin_head are external sub-modules; configured to None here.
    return {'output': head_score,
            'image_feature': image_embedding,
            'text_feature': text_embedding}


# Pure-JAX f32 reference (same math, no Pallas) for a sanity check.
def ref_forward(input_data, params):
    masks = input_data['masks']
    imgs = input_data['imgs']
    labels = input_data['labels']
    b, t, C, H, W = imgs.shape
    L = masks.shape[-1]
    i = jnp.arange(t)
    starts = (i * L) // t
    ends = ((i + 1) * L + t - 1) // t
    idx = jnp.arange(L)
    sel = (idx[None] >= starts[:, None]) & (idx[None] < ends[:, None])
    pooled = jnp.max(jnp.where(sel[None], masks[:, None, :], -jnp.inf), axis=-1)
    masks3 = pooled[:, None, :]
    x = imgs.reshape(b * t, C, H * W).mean(-1)
    emb = x @ params['w_img'] + params['b_img']
    image_embedding = emb.reshape(b, t, -1).transpose(0, 2, 1) * masks3
    score = jnp.einsum('bdt,dk->bkt', image_embedding, params['w_head']) \
        + params['b_head'].T[None]
    head_score = score * masks3
    return {'output': head_score, 'image_feature': image_embedding,
            'text_feature': labels}


if __name__ == "__main__":
    key = jax.random.PRNGKey(0)
    k1, k2, k3, k4, k5, k6 = jax.random.split(key, 6)

    b, t, C, H, W = 2, 8, 4, 16, 16      # small shapes consistent with the module
    D, K = 32, 11                        # embedding dim, num action classes
    L = 16                               # raw temporal length of masks (pooled to t)

    imgs = jax.random.normal(k1, (b, t, C, H, W), jnp.float32)
    masks = (jax.random.uniform(k2, (b, L)) > 0.2).astype(jnp.float32)
    labels = jax.random.randint(k3, (b, t), 0, K).astype(jnp.int32)

    params = {
        'w_img': 0.1 * jax.random.normal(k4, (C, D), jnp.float32),
        'b_img': 0.01 * jax.random.normal(k5, (1, D), jnp.float32),
        'w_head': 0.1 * jax.random.normal(k6, (D, K), jnp.float32),
        'b_head': jnp.zeros((1, K), jnp.float32),
    }

    # One-time weight preparation (hoisted out of the forward path).
    prepared = jax.tree_util.tree_map(
        lambda x: x, prepare_weights(params, C, H, W))

    input_data = {'imgs': imgs, 'masks': masks, 'labels': labels}
    out = action_clip_segmentation_forward(input_data, prepared)
    out = jax.tree_util.tree_map(jax.block_until_ready, out)

    ref = ref_forward(input_data, params)
    assert out['output'].shape == (b, K, t)
    assert out['image_feature'].shape == (b, D, t)
    # bf16 input stream vs f32 reference -> tolerance loosened accordingly.
    assert jnp.allclose(out['output'], ref['output'], rtol=2e-2, atol=2e-3)
    assert jnp.allclose(out['image_feature'], ref['image_feature'], rtol=2e-2, atol=2e-3)
    assert jnp.array_equal(out['text_feature'], ref['text_feature'])

    print("KERNEL_OK")
</pallas_src>

<mosaic_0001>
module attributes {stable_mosaic.version = 11 : i64} {
  func.func @kernel(%arg0: i32, %arg1: memref<16x1024xbf16, #tpu.memory_space<vmem>>, %arg2: memref<16x1xf32, #tpu.memory_space<vmem>>, %arg3: memref<1024x32xbf16, #tpu.memory_space<vmem>>, %arg4: memref<1x32xf32, #tpu.memory_space<vmem>>, %arg5: memref<32x128xf32, #tpu.memory_space<vmem>>, %arg6: memref<1x128xf32, #tpu.memory_space<vmem>>, %arg7: memref<16x128xf32, #tpu.memory_space<vmem>>) attributes {dimension_semantics = [#tpu.dimension_semantics<parallel>], iteration_bounds = array<i64: 1>, scalar_prefetch = 0 : i64, scratch_operands = 0 : i64, tpu.core_type = #tpu.core_type<tc>, window_params = [{transform_indices = @transform_0, window_bounds = array<i64: 16, 1024>}, {transform_indices = @transform_1, window_bounds = array<i64: 16, 1>}, {pipeline_mode = #tpu.pipeline_mode<synchronous>, transform_indices = @transform_2, window_bounds = array<i64: 1024, 32>}, {pipeline_mode = #tpu.pipeline_mode<synchronous>, transform_indices = @transform_3, window_bounds = array<i64: 1, 32>}, {pipeline_mode = #tpu.pipeline_mode<synchronous>, transform_indices = @transform_4, window_bounds = array<i64: 32, 128>}, {pipeline_mode = #tpu.pipeline_mode<synchronous>, transform_indices = @transform_5, window_bounds = array<i64: 1, 128>}, {transform_indices = @transform_6, window_bounds = array<i64: 16, 128>}]} {
    %c0 = arith.constant 0 : index
    %c0_0 = arith.constant 0 : index
    %0 = vector.load %arg2[%c0, %c0_0] : memref<16x1xf32, #tpu.memory_space<vmem>>, vector<16x1xf32>
    %c0_1 = arith.constant 0 : index
    %c0_2 = arith.constant 0 : index
    %1 = vector.load %arg1[%c0_1, %c0_2] : memref<16x1024xbf16, #tpu.memory_space<vmem>>, vector<16x1024xbf16>
    %c0_3 = arith.constant 0 : index
    %c0_4 = arith.constant 0 : index
    %2 = vector.load %arg3[%c0_3, %c0_4] : memref<1024x32xbf16, #tpu.memory_space<vmem>>, vector<1024x32xbf16>
    %cst = arith.constant dense<0.000000e+00> : vector<16x32xf32>
    %3 = tpu.matmul %1, %2, %cst {dimension_numbers = #tpu.dot_dimension_numbers<[1], [0], [0], [1], [0, 0, 1, 1], [], []>} : vector<16x1024xbf16>, vector<1024x32xbf16>, vector<16x32xf32> -> vector<16x32xf32>
    %c0_5 = arith.constant 0 : index
    %c0_6 = arith.constant 0 : index
    %4 = vector.load %arg4[%c0_5, %c0_6] : memref<1x32xf32, #tpu.memory_space<vmem>>, vector<1x32xf32>
    %5 = vector.broadcast %4 : vector<1x32xf32> to vector<16x32xf32>
    %6 = arith.addf %3, %5 : vector<16x32xf32>
    %7 = vector.broadcast %0 : vector<16x1xf32> to vector<16x32xf32>
    %8 = arith.mulf %6, %7 : vector<16x32xf32>
    %c0_7 = arith.constant 0 : index
    %c0_8 = arith.constant 0 : index
    %9 = vector.load %arg5[%c0_7, %c0_8] : memref<32x128xf32, #tpu.memory_space<vmem>>, vector<32x128xf32>
    %cst_9 = arith.constant dense<0.000000e+00> : vector<16x128xf32>
    %10 = tpu.matmul %8, %9, %cst_9 {dimension_numbers = #tpu.dot_dimension_numbers<[1], [0], [0], [1], [0, 0, 1, 1], [], []>} : vector<16x32xf32>, vector<32x128xf32>, vector<16x128xf32> -> vector<16x128xf32>
    %c0_10 = arith.constant 0 : index
    %c0_11 = arith.constant 0 : index
    %11 = vector.load %arg6[%c0_10, %c0_11] : memref<1x128xf32, #tpu.memory_space<vmem>>, vector<1x128xf32>
    %12 = vector.broadcast %11 : vector<1x128xf32> to vector<16x128xf32>
    %13 = arith.addf %10, %12 : vector<16x128xf32>
    %14 = tpu.iota {dimensions = array<i32: 1>} : vector<16x128xi32>
    %c32_i32 = arith.constant 32 : i32
    %15 = vector.broadcast %c32_i32 : i32 to vector<16x128xi32>
    %16 = arith.cmpi slt, %14, %15 : vector<16x128xi32>
    %17 = vector.broadcast %0 : vector<16x1xf32> to vector<16x128xf32>
    %18 = arith.mulf %13, %17 : vector<16x128xf32>
    %19 = arith.select %16, %13, %18 : vector<16x128xi1>, vector<16x128xf32>
    %c0_12 = arith.constant 0 : index
    %c0_13 = arith.constant 0 : index
    %20 = vector.load %arg7[%c0_12, %c0_13] : memref<16x128xf32, #tpu.memory_space<vmem>>, vector<16x128xf32>
    tpu.vector_store %arg7[%c0_12, %c0_13], %19 {strides = array<i32>} : memref<16x128xf32, #tpu.memory_space<vmem>>, vector<16x128xf32>,
    return
  }
  func.func @transform_0(%arg0: i32) -> (i32, i32) {
    %c0_i32 = arith.constant 0 : i32
    %c0_i32_0 = arith.constant 0 : i32
    return %arg0, %c0_i32 : i32, i32
  }
  func.func @transform_1(%arg0: i32) -> (i32, i32) {
    %c0_i32 = arith.constant 0 : i32
    %c0_i32_0 = arith.constant 0 : i32
    return %arg0, %c0_i32 : i32, i32
  }
  func.func @transform_2(%arg0: i32) -> (i32, i32) {
    %c0_i32 = arith.constant 0 : i32
    %c0_i32_0 = arith.constant 0 : i32
    %c0_i32_1 = arith.constant 0 : i32
    return %c0_i32, %c0_i32_0 : i32, i32
  }
  func.func @transform_3(%arg0: i32) -> (i32, i32) {
    %c0_i32 = arith.constant 0 : i32
    %c0_i32_0 = arith.constant 0 : i32
    %c0_i32_1 = arith.constant 0 : i32
    return %c0_i32, %c0_i32_0 : i32, i32
  }
  func.func @transform_4(%arg0: i32) -> (i32, i32) {
    %c0_i32 = arith.constant 0 : i32
    %c0_i32_0 = arith.constant 0 : i32
    %c0_i32_1 = arith.constant 0 : i32
    return %c0_i32, %c0_i32_0 : i32, i32
  }
  func.func @transform_5(%arg0: i32) -> (i32, i32) {
    %c0_i32 = arith.constant 0 : i32
    %c0_i32_0 = arith.constant 0 : i32
    %c0_i32_1 = arith.constant 0 : i32
    return %c0_i32, %c0_i32_0 : i32, i32
  }
  func.func @transform_6(%arg0: i32) -> (i32, i32) {
    %c0_i32 = arith.constant 0 : i32
    %c0_i32_0 = arith.constant 0 : i32
    return %arg0, %c0_i32 : i32, i32
  }
}

</mosaic_0001>

<bundles_post_ra>
// kernel: tpu_custom_call.1
= control target key start
LH: loop header
LB: loop body
LE: loop exit
PB: predicated region body
PF: predicated region fallthrough
CT: control target
= control target key end

     0   :  { %v1170_v2 = vmov 0   ;;  %s1461_s0 = inlined_call_operand.vmem [shape: bf16[16,1024], index: 0, kind: input, shape index: {}]   ;;  %s1462_s1 = inlined_call_operand.vmem [shape: f32[16,1], index: 1, kind: input, shape index: {}]   ;;  %s1463_s2 = inlined_call_operand.vmem [shape: bf16[1024,32], index: 2, kind: input, shape index: {}]   ;;  %s1464_s3 = inlined_call_operand.vmem [shape: f32[1,32], index: 3, kind: input, shape index: {}]   ;;  %s1465_s4 = inlined_call_operand.vmem [shape: f32[32,128], index: 4, kind: input, shape index: {}]   ;;  %s1466_s5 = inlined_call_operand.vmem [shape: f32[1,128], index: 5, kind: input, shape index: {}]   ;;  %s1467_s6 = inlined_call_operand.hbm [shape: f32[16,128], index: 6, kind: output, shape index: {}]  }
   0x1   :  { %v1082_v0 = vld [vmem:[%s1463_s2 + $0x40] sm:$0xff]   ;;  %1081 = vset.pattern.permute.xlu0 %v1170_v2  ;;  %v1086_v5 = vld [vmem:[%s1463_s2 + $0x48] sm:$0xff]   ;;  %v1090_v9 = vld [vmem:[%s1463_s2 + $0x50] sm:$0xff]  }
   0x2   :  { %v1083_v1 = vld [vmem:[%s1463_s2 + $0xc0] sm:$0xff]   ;;  %964 = vmatprep.subr.bf16.mxu0 %v1082_v0  ;;  %v1087_v6 = vld [vmem:[%s1463_s2 + $0xc8] sm:$0xff]   ;;  %v1091_v10 = vld [vmem:[%s1463_s2 + $0xd0] sm:$0xff]  }
   0x3   :  { %v1084_v3 = vld [vmem:[%s1463_s2] sm:$0xff]   ;;  %986 = vmatprep.subr.bf16.mxu1 %v1083_v1  ;;  %v1088_v7 = vld [vmem:[%s1463_s2 + $0x8] sm:$0xff]   ;;  %v1092_v11 = vld [vmem:[%s1463_s2 + $0x10] sm:$0xff]  }
   0x4   :  { %v1085_v4 = vld [vmem:[%s1463_s2 + $0x80] sm:$0xff]   ;;  %965 = vmatpush3.bf16.msra.mxu0 %v1084_v3  ;;  %v1089_v8 = vld [vmem:[%s1463_s2 + $0x88] sm:$0xff]   ;;  %v1093_v12 = vld [vmem:[%s1463_s2 + $0x90] sm:$0xff]  }
   0x5   :  { %987 = vmatpush3.bf16.msra.mxu1 %v1085_v4  ;;  %966 = vmatprep.subr.bf16.mxu0 %v1086_v5  ;;  %v1094_v13 = vld [vmem:[%s1463_s2 + $0x58] sm:$0xff]   ;;  %v1098_v17 = vld [vmem:[%s1463_s2 + $0x60] sm:$0xff]   ;;  %v1102_v21 = vld [vmem:[%s1463_s2 + $0x68] sm:$0xff]  }
   0x6   :  { %988 = vmatprep.subr.bf16.mxu1 %v1087_v6  ;;  %v1095_v14 = vld [vmem:[%s1463_s2 + $0xd8] sm:$0xff]   ;;  %v1099_v18 = vld [vmem:[%s1463_s2 + $0xe0] sm:$0xff]   ;;  %v1103_v22 = vld [vmem:[%s1463_s2 + $0xe8] sm:$0xff]  }
   0x7   :  { %v1096_v15 = vld [vmem:[%s1463_s2 + $0x18] sm:$0xff]   ;;  %v1100_v19 = vld [vmem:[%s1463_s2 + $0x20] sm:$0xff]   ;;  %v1104_v23 = vld [vmem:[%s1463_s2 + $0x28] sm:$0xff]  }
   0x8   :  { %967 = vmatpush3.bf16.msra.mxu0 %v1088_v7  ;;  %v1097_v16 = vld [vmem:[%s1463_s2 + $0x98] sm:$0xff]   ;;  %v1101_v20 = vld [vmem:[%s1463_s2 + $0xa0] sm:$0xff]   ;;  %v1105_v24 = vld [vmem:[%s1463_s2 + $0xa8] sm:$0xff]  }
   0x9   :  { %989 = vmatpush3.bf16.msra.mxu1 %v1089_v8  ;;  %968 = vmatprep.subr.bf16.mxu0 %v1090_v9  ;;  %v1106_v25 = vld [vmem:[%s1463_s2 + $0x70] sm:$0xff]   ;;  %v1110_v29 = vld [vmem:[%s1463_s2 + $0x78] sm:$0xff]   ;;  %v27_v33 = vld [vmem:[%s1461_s0] sm:$0xff] }
   0xa   :  { %990 = vmatprep.subr.bf16.mxu1 %v1091_v10  ;;  %v1107_v26 = vld [vmem:[%s1463_s2 + $0xf0] sm:$0xff]   ;;  %v1111_v30 = vld [vmem:[%s1463_s2 + $0xf8] sm:$0xff]   ;;  %v31_v34 = vld [vmem:[%s1461_s0 + $0x20] sm:$0xff] }
   0xb   :  { %v1108_v27 = vld [vmem:[%s1463_s2 + $0x30] sm:$0xff]   ;;  %v1112_v31 = vld [vmem:[%s1463_s2 + $0x38] sm:$0xff]   ;;  %v28_v35 = vld [vmem:[%s1461_s0 + $0x8] sm:$0xff]  ;;  %v889_v36 = vcombine.low %v27_v33, %v31_v34  ;;  %v890_v37 = vcombine.high %v27_v33, %v31_v34 }
   0xc   :  { %969 = vmatpush3.bf16.msra.mxu0 %v1092_v11  ;;  %v1109_v28 = vld [vmem:[%s1463_s2 + $0xb0] sm:$0xff]   ;;  %v1113_v32 = vld [vmem:[%s1463_s2 + $0xb8] sm:$0xff]   ;;  %v32_v38 = vld [vmem:[%s1461_s0 + $0x28] sm:$0xff] }
   0xd   :  { %991 = vmatpush3.bf16.msra.mxu1 %v1093_v12  ;;  %970 = vmatprep.subr.bf16.mxu0 %v1094_v13  ;;  %v891_v39 = vcombine.low %v28_v35, %v32_v38  ;;  %v892_v40 = vcombine.high %v28_v35, %v32_v38  ;;  %v1114_v41 = vld [vmem:[%s1463_s2 + $0x140] sm:$0xff]   ;;  %v1118_v45 = vld [vmem:[%s1463_s2 + $0x148] sm:$0xff]   ;;  %v1122_v49 = vld [vmem:[%s1463_s2 + $0x150] sm:$0xff]  }
   0xe   :  { %992 = vmatprep.subr.bf16.mxu1 %v1095_v14  ;;  %626 = vmatprep.mubr.bf16.mxu0 %v890_v37  ;;  %v1115_v42 = vld [vmem:[%s1463_s2 + $0x1c0] sm:$0xff]   ;;  %v1119_v46 = vld [vmem:[%s1463_s2 + $0x1c8] sm:$0xff]   ;;  %v1123_v50 = vld [vmem:[%s1463_s2 + $0x1d0] sm:$0xff]  }
   0xf   :  { %667 = vmatprep.mubr.bf16.mxu1 %v892_v40  ;;  %v1116_v43 = vld [vmem:[%s1463_s2 + $0x100] sm:$0xff]   ;;  %v1120_v47 = vld [vmem:[%s1463_s2 + $0x108] sm:$0xff]   ;;  %v1124_v51 = vld [vmem:[%s1463_s2 + $0x110] sm:$0xff]  }
  0x10   :  { %971 = vmatpush3.bf16.msra.mxu0 %v1096_v15  ;;  %v1117_v44 = vld [vmem:[%s1463_s2 + $0x180] sm:$0xff]   ;;  %v1121_v48 = vld [vmem:[%s1463_s2 + $0x188] sm:$0xff]   ;;  %v1125_v52 = vld [vmem:[%s1463_s2 + $0x190] sm:$0xff]  }
  0x11   :  { %993 = vmatpush3.bf16.msra.mxu1 %v1097_v16  ;;  %972 = vmatprep.subr.bf16.mxu0 %v1098_v17  ;;  %v1126_v53 = vld [vmem:[%s1463_s2 + $0x158] sm:$0xff]   ;;  %v1130_v57 = vld [vmem:[%s1463_s2 + $0x160] sm:$0xff]   ;;  %v1134_v61 = vld [vmem:[%s1463_s2 + $0x168] sm:$0xff]  }
  0x12   :  { %994 = vmatprep.subr.bf16.mxu1 %v1099_v18  ;;  %v1127_v54 = vld [vmem:[%s1463_s2 + $0x1d8] sm:$0xff]   ;;  %v1131_v58 = vld [vmem:[%s1463_s2 + $0x1e0] sm:$0xff]   ;;  %v1135_v62 = vld [vmem:[%s1463_s2 + $0x1e8] sm:$0xff]  }
  0x13   :  { %v1128_v55 = vld [vmem:[%s1463_s2 + $0x118] sm:$0xff]   ;;  %v1132_v59 = vld [vmem:[%s1463_s2 + $0x120] sm:$0xff]   ;;  %v1136_v63 = vld [vmem:[%s1463_s2 + $0x128] sm:$0xff]  }
  0x14   :  { %973 = vmatpush3.bf16.msra.mxu0 %v1100_v19  ;;  %v1129_v56 = vld [vmem:[%s1463_s2 + $0x198] sm:$0xff]   ;;  %v1133_v60 = vld [vmem:[%s1463_s2 + $0x1a0] sm:$0xff]   ;;  %v1137_v0 = vld [vmem:[%s1463_s2 + $0x1a8] sm:$0xff]  }
  0x15   :  { %995 = vmatpush3.bf16.msra.mxu1 %v1101_v20  ;;  %974 = vmatprep.subr.bf16.mxu0 %v1102_v21  ;;  %v1138_v1 = vld [vmem:[%s1463_s2 + $0x170] sm:$0xff]   ;;  %v1142_v5 = vld [vmem:[%s1463_s2 + $0x178] sm:$0xff]   ;;  %v25_v15 = vld [vmem:[%s1462_s1] sm:$0xff] }
  0x16   :  { %996 = vmatprep.subr.bf16.mxu1 %v1103_v22  ;;  %v1139_v2 = vld [vmem:[%s1463_s2 + $0x1f0] sm:$0xff]   ;;  %v1143_v6 = vld [vmem:[%s1463_s2 + $0x1f8] sm:$0xff]   ;;  %760 = vperm.xlu0 %1081, %v25_v15  }
  0x17   :  { %v1140_v3 = vld [vmem:[%s1463_s2 + $0x130] sm:$0xff]   ;;  %v1144_v7 = vld [vmem:[%s1463_s2 + $0x138] sm:$0xff]  }
  0x18   :  { %975 = vmatpush3.bf16.msra.mxu0 %v1104_v23  ;;  %v1141_v4 = vld [vmem:[%s1463_s2 + $0x1b0] sm:$0xff]   ;;  %v1145_v8 = vld [vmem:[%s1463_s2 + $0x1b8] sm:$0xff]  }
  0x19   :  { %997 = vmatpush3.bf16.msra.mxu1 %v1105_v24  ;;  %976 = vmatprep.subr.bf16.mxu0 %v1106_v25  ;;  %v29_v9 = vld [vmem:[%s1461_s0 + $0x10] sm:$0xff]  ;;  %v30_v13 = vld [vmem:[%s1461_s0 + $0x18] sm:$0xff] }
  0x1a   :  { %998 = vmatprep.subr.bf16.mxu1 %v1107_v26  ;;  %v33_v10 = vld [vmem:[%s1461_s0 + $0x30] sm:$0xff]  ;;  %v34_v14 = vld [vmem:[%s1461_s0 + $0x38] sm:$0xff] }
  0x1b   :  { %v893_v11 = vcombine.low %v29_v9, %v33_v10  ;;  %v894_v12 = vcombine.high %v29_v9, %v33_v10  ;;  %v895_v16 = vcombine.low %v30_v13, %v34_v14  ;;  %v896_v17 = vcombine.high %v30_v13, %v34_v14 }
  0x1c   :  { %977 = vmatpush3.bf16.msra.mxu0 %v1108_v27 }
  0x1d   :  { %999 = vmatpush3.bf16.msra.mxu1 %v1109_v28  ;;  %978 = vmatprep.subr.bf16.mxu0 %v1110_v29 }
  0x1e   :  { %1000 = vmatprep.subr.bf16.mxu1 %v1111_v30 }
  0x20   :  { %979 = vmatpush3.bf16.msra.mxu0 %v1112_v31 }
  0x21   :  { %1001 = vmatpush3.bf16.msra.mxu1 %v1113_v32  ;;  %1008 = vmatprep.subr.bf16.mxu0 %v1114_v41 }
  0x22   :  { %1030 = vmatprep.subr.bf16.mxu1 %v1115_v42 }
  0x23   :  { %627 = vmatmul.mubr.bf16.vlgmr.msra.gmra.mrb[0].mxu0 %v889_v36 }
  0x24   :  { %668 = vmatmul.mubr.bf16.vlgmr.msra.gmra.mrb[0].mxu1 %v891_v39  ;;  %1009 = vmatpush3.bf16.msra.mxu0 %v1116_v43 }
  0x25   :  { %1031 = vmatpush3.bf16.msra.mxu1 %v1117_v44  ;;  %1010 = vmatprep.subr.bf16.mxu0 %v1118_v45 }
  0x26   :  { %1032 = vmatprep.subr.bf16.mxu1 %v1119_v46 }
  0x28   :  { %1011 = vmatpush3.bf16.msra.mxu0 %v1120_v47 }
  0x29   :  { %1033 = vmatpush3.bf16.msra.mxu1 %v1121_v48  ;;  %1012 = vmatprep.subr.bf16.mxu0 %v1122_v49 }
  0x2a   :  { %1034 = vmatprep.subr.bf16.mxu1 %v1123_v50 }
  0x2c   :  { %1013 = vmatpush3.bf16.msra.mxu0 %v1124_v51 }
  0x2d   :  { %1035 = vmatpush3.bf16.msra.mxu1 %v1125_v52  ;;  %1014 = vmatprep.subr.bf16.mxu0 %v1126_v53 }
  0x2e   :  { %1036 = vmatprep.subr.bf16.mxu1 %v1127_v54 }
  0x30   :  { %1015 = vmatpush3.bf16.msra.mxu0 %v1128_v55 }
  0x31   :  { %1037 = vmatpush3.bf16.msra.mxu1 %v1129_v56  ;;  %1016 = vmatprep.subr.bf16.mxu0 %v1130_v57 }
  0x32   :  { %1038 = vmatprep.subr.bf16.mxu1 %v1131_v58 }
  0x34   :  { %1017 = vmatpush3.bf16.msra.mxu0 %v1132_v59 }
  0x35   :  { %1039 = vmatpush3.bf16.msra.mxu1 %v1133_v60  ;;  %1018 = vmatprep.subr.bf16.mxu0 %v1134_v61 }
  0x36   :  { %1040 = vmatprep.subr.bf16.mxu1 %v1135_v62 }
  0x38   :  { %1019 = vmatpush3.bf16.msra.mxu0 %v1136_v63 }
  0x39   :  { %1041 = vmatpush3.bf16.msra.mxu1 %v1137_v0  ;;  %1020 = vmatprep.subr.bf16.mxu0 %v1138_v1 }
  0x3a   :  { %1042 = vmatprep.subr.bf16.mxu1 %v1139_v2 }
  0x3c   :  { %1021 = vmatpush3.bf16.msra.mxu0 %v1140_v3 }
  0x3d   :  { %1043 = vmatpush3.bf16.msra.mxu1 %v1141_v4  ;;  %1022 = vmatprep.subr.bf16.mxu0 %v1142_v5 }
  0x3e   :  { %1044 = vmatprep.subr.bf16.mxu1 %v1143_v6 }
  0x40   :  { %1023 = vmatpush3.bf16.msra.mxu0 %v1144_v7 }
  0x41   :  { %1045 = vmatpush3.bf16.msra.mxu1 %v1145_v8 }
  0x42   :  { %11 = vsyncpa [#allocation3], 0  ;;  %708 = vmatprep.mubr.bf16.mxu0 %v894_v12  ;;  %v26_v18 = vld [vmem:[%s1462_s1 + $0x8] sm:$0xff]  ;;  %749 = vmatprep.mubr.bf16.mxu1 %v896_v17  ;;  %v770_v19 = vld [vmem:[%s1465_s4] sm:$0xff]  ;;  %vm781_vm0 = vcmask 261120   ;;  %v863_v62 = vlaneseq  ;;  %s1171_s8 = smov [#allocation2]  }
  0x43   :  { %709 = vmatmul.mubr.bf16.vlgmr.msra.gmra.mrb[4].mxu0 %v893_v11  ;;  %765 = vperm.xlu0 %1081, %v26_v18   ;;  %v771_v20 = vld [vmem:[%s1465_s4 + $0x8] sm:$0xff]  ;;  %v772_v22 = vld [vmem:[%s1465_s4 + $0x10] sm:$0xff]  ;;  %v773_v23 = vld [vmem:[%s1465_s4 + $0x18] sm:$0xff]  ;;  %s877_s9 = sshll.u32 %s1171_s8, 4  ;;  %s878_s9 = int_to_ptr.vmem [resolvable:$true] %s877_s9 }
  0x44   :  { %750 = vmatmul.mubr.bf16.vlgmr.msra.gmra.mrb[4].mxu1 %v895_v16  ;;  %v1069_v21 = vpack.c.bf16 %v771_v20, %v770_v19  ;;  %v1073_v24 = vpack.c.bf16 %v773_v23, %v772_v22  ;;  %v888_v27 = vld [vmem:[%s1464_s3] ss:$0 sm:$0xff]  ;;  %v864_v0 = vand.u32 127, %v863_v62  ;;  %s1146_s10 = scalar_lea.vmem %s878_s9, 256  ;;  %p1151_p1 = scmp.lt.s32.totalorder %s878_s9, %s878_s9 }
  0x45   :  { %v961_v63 = vld [vmem:[%s1466_s5] ss:$0 sm:$0xff]  ;;  %p1147_p0 = scmp.ne.s32.totalorder %s878_s9, %s1146_s10  ;;  %p1152_p2 = scmp.lt.s32.totalorder %s1146_s10, %s1146_s10 }
  0x46   :  { %1070 = vmatprep.subr.bf16.mxu0 %v1069_v21  ;;  %vm865_vm1 = vcmp.lt.s32.totalorder %v864_v0, 32 }
  0x47   :  { %1072 = vmatpush3.bf16.msra.mxu0 %v1069_v21  ;;  %p1153_p3 = por %p1152_p2, %p1151_p1 }
  0x48   :  { %1074 = vmatprep.subr.bf16.mxu0 %v1073_v24 }
  0x49   :  { %p1154_p4 = pnand %p1153_p3, %p1147_p0 }
  0x4b   :  { %1076 = vmatpush3.bf16.msra.mxu0 %v1073_v24 }
  0x95   :  { %v761_v43 = vpop.permute.xlu0 %760 }
  0xc2   :  { %v766_v60 = vpop.permute.xlu0 %765 }
  0xf6   :  { %v980_v25 = vpop.f32.mrb[0].mxu0 }
  0xf7   :  { %v1002_v26 = vpop.f32.mrb[0].mxu1  ;;  %v981_v28 = vpop.f32.mrb[1].mxu0 }
  0xf8   :  { %v982_v29 = vadd.f32 %v981_v28, %v980_v25  ;;  %v1003_v30 = vpop.f32.mrb[1].mxu1  ;;  %v983_v31 = vpop.f32.mrb[2].mxu0 }
  0xf9   :  { %v1004_v32 = vadd.f32 %v1003_v30, %v1002_v26  ;;  %v1005_v33 = vpop.f32.mrb[2].mxu1  ;;  %v984_v34 = vpop.f32.mrb[3].mxu0 }
  0xfa   :  { %v629_v35 = vadd.f32 %v982_v29, %v888_v27  ;;  %v985_v36 = vadd.f32 %v984_v34, %v983_v31  ;;  %v1006_v37 = vpop.f32.mrb[3].mxu1 }
  0xfb   :  { %v1007_v38 = vadd.f32 %v1006_v37, %v1005_v33 }
  0xfc   :  { %v670_v39 = vadd.f32 %v1004_v32, %v629_v35  ;;  %v632_v40 = vadd.f32 %v985_v36, %v888_v27 }
  0xfe   :  { %v673_v41 = vadd.f32 %v1007_v38, %v632_v40 }
 0x116   :  { %v1024_v42 = vpop.f32.mrb[4].mxu0 }
 0x117   :  { %v1046_v44 = vpop.f32.mrb[4].mxu1  ;;  %v1025_v45 = vpop.f32.mrb[5].mxu0 }
 0x118   :  { %v1026_v46 = vadd.f32 %v1025_v45, %v1024_v42  ;;  %v1047_v47 = vpop.f32.mrb[5].mxu1  ;;  %v1027_v48 = vpop.f32.mrb[6].mxu0 }
 0x119   :  { %v1048_v49 = vadd.f32 %v1047_v47, %v1046_v44  ;;  %v1049_v50 = vpop.f32.mrb[6].mxu1  ;;  %v1028_v51 = vpop.f32.mrb[7].mxu0 }
 0x11a   :  { %v711_v52 = vadd.f32 %v1026_v46, %v670_v39  ;;  %v1029_v53 = vadd.f32 %v1028_v51, %v1027_v48  ;;  %v1050_v54 = vpop.f32.mrb[7].mxu1 }
 0x11b   :  { %v1051_v55 = vadd.f32 %v1050_v54, %v1049_v50 }
 0x11c   :  { %v752_v56 = vadd.f32 %v1048_v49, %v711_v52  ;;  %v714_v57 = vadd.f32 %v1029_v53, %v673_v41 }
 0x11e   :  { %v768_v58 = vmul.f32 %v761_v43, %v752_v56  ;;  %v755_v59 = vadd.f32 %v1051_v55, %v714_v57 }
 0x120   :  { %v769_v61 = vmul.f32 %v766_v60, %v755_v59  ;;  %1066 = vmatprep.mubr.msk.f32.mxu0 %vm781_vm0, %v768_v58 }
 0x122   :  { %1067 = vmatmul.mubr.msk.f32.vlgmr.msra.gmra.mrb[8].mxu0 %vm781_vm0, %v769_v61 }
 0x1f5   :  { %v1068_v1 = vpop.f32.mrb[8].mxu0 }
 0x1f6   :  { %v860_v2 = vadd.f32 %v1068_v1, %v961_v63  ;;  %v854_v3 = vpop.f32.mrb[9].mxu0 }
 0x1f7   :  { %v855_v4 = vadd.f32 %v961_v63, %v854_v3 }
 0x1f8   :  { %v867_v5 = vmul.f32 %v860_v2, %v766_v60 }
 0x1f9   :  { %v866_v6 = vmul.f32 %v855_v4, %v761_v43 }
 0x1fa   :  { %v869_v7 = vsel %vm865_vm1, %v860_v2, %v867_v5 }
 0x1fb   :  { %871 = vst [vmem:[#allocation2 + $0x8] sm:$0xff] %v869_v7  ;;  %v868_v8 = vsel %vm865_vm1, %v855_v4, %v866_v6 }
 0x1fc   :  { %870 = vst [vmem:[#allocation2] sm:$0xff] %v868_v8 }
 0x1fd   :  { %1157 = shalt.err (!%p1154_p4)
}
 0x1fe   :  { %s1158_s12 = scalar_lea.hbm %s1467_s6, 256 }
 0x1ff   :  { %p1159_p5 = scmp.ne.s32.totalorder %s1467_s6, %s1158_s12  ;;  %p1162_p6 = scmp.lt.u32.totalorder %s1158_s12, %s1467_s6 }
 0x201   :  { %p1164_p7 = pnand %p1162_p6, %p1159_p5 }
 0x203   :  { %1167 = shalt.err (!%p1164_p7)
}
 0x204   :  { %s1172_s17 = smov 128   ;;  %s1173_s18 = smov 8  }
 0x205   :  { %883 = dma.vmem_to_hbm [thread:$0]  %s878_s9, 256, %s1467_s6, [#allocation3], %s1172_s17, %s1172_s17, %s1173_s18  }
 0x206   :  { %1168 = dma.done.wait [#allocation3], 256  }
 0x207   :  { %1169 = vsyncadd [#allocation3], 4294967040 }
 0x208   :  { %887 = vsyncpa [#allocation3], 1 }

</bundles_post_ra>
